<compile_context>
chip_gen: v7x
topology: tpu7x:2x2x1
jax: 0.10.0
libtpu: 0.0.40
codegen_flags: <defaults>
</compile_context>

<pallas_src>
import functools

import jax
import jax.numpy as jnp
from jax.experimental import pallas as pl
from jax.experimental.pallas import tpu as pltpu

N_PAD = 128  # lane-dense padded width of the final layer (true width = 10)


def _round_up(x, m):
    return (x + m - 1) // m * m


def mlp_kernel(x_ref,
               w1_ref, b1_ref,
               w2_ref, b2_ref,
               w3_ref, b3_ref,
               w4_ref, b4_ref,
               o_ref):
    # One batch tile per grid step.  Weight/bias refs have constant index maps,
    # so they stay resident in VMEM for the whole grid (single DMA each).
    # x is already bf16; matmuls run on the MXU with f32 accumulation, bias add
    # + ReLU run in f32 on the VPU.
    x = x_ref[...]

    h = jnp.dot(x, w1_ref[...], preferred_element_type=jnp.float32) + b1_ref[...]
    h = jnp.maximum(h, 0.0)

    h = jnp.dot(h.astype(jnp.bfloat16), w2_ref[...],
                preferred_element_type=jnp.float32) + b2_ref[...]
    h = jnp.maximum(h, 0.0)

    h = jnp.dot(h.astype(jnp.bfloat16), w3_ref[...],
                preferred_element_type=jnp.float32) + b3_ref[...]
    h = jnp.maximum(h, 0.0)

    # Last layer is zero-padded to 128 output lanes -> unmasked lane-dense store.
    h = jnp.dot(h.astype(jnp.bfloat16), w4_ref[...],
                preferred_element_type=jnp.float32) + b4_ref[...]

    o_ref[...] = h.astype(o_ref.dtype)


def prepare_params(params):
    """One-time conversion of f32 (in,out) Linear params to kernel layout.

    bf16 weights (halves resident VMEM / HBM traffic), f32 (1, out) biases,
    last layer zero-padded from 10 to 128 output columns.
    """
    (w1, b1), (w2, b2), (w3, b3), (w4, b4) = params
    w4p = jnp.zeros((w4.shape[0], N_PAD), jnp.bfloat16).at[:, :10].set(
        w4.astype(jnp.bfloat16))
    b4p = jnp.zeros((1, N_PAD), jnp.float32).at[:, :10].set(
        b4.reshape(1, -1).astype(jnp.float32))
    return (w1.astype(jnp.bfloat16), b1.reshape(1, -1).astype(jnp.float32),
            w2.astype(jnp.bfloat16), b2.reshape(1, -1).astype(jnp.float32),
            w3.astype(jnp.bfloat16), b3.reshape(1, -1).astype(jnp.float32),
            w4p, b4p)


@functools.partial(jax.jit, static_argnames=("tb",))
def mlp_forward(x, prepared_params, *, tb=2048):
    """Forward pass.  `x` should already be bf16 (cast happens here otherwise,
    but it is cheaper to keep activations bf16 upstream)."""
    w1b, b1, w2b, b2, w3b, b3, w4p, b4p = prepared_params
    B, D = x.shape
    assert D == 28 * 28

    if x.dtype != jnp.bfloat16:
        # Fallback cast; best to hand x in as bf16 to avoid this extra HBM pass.
        x = x.astype(jnp.bfloat16)

    # Batch tile: as large as requested (amortizes the ~0.35us/step overhead),
    # never larger than the sublane-rounded batch, always a multiple of 8.
    tb = max(8, min(int(tb), _round_up(B, 8)))
    # v7x has 2 TensorCores: for non-tiny batches make sure the "parallel"
    # batch axis has at least 2 grid steps so both cores get work.
    if B >= 256 and _round_up(B, 8) <= tb:
        tb = _round_up((B + 1) // 2, 8)
    tb = _round_up(tb, 8)
    Bp = _round_up(B, tb)
    if Bp != B:
        x = jnp.pad(x, ((0, Bp - B), (0, 0)))

    grid = (Bp // tb,)

    def batch_map(i):
        return (i, 0)

    def const_map(i):
        return (0, 0)

    def full_spec(a):
        return pl.BlockSpec(a.shape, const_map)

    w_elems = 784 * 128 + 128 * 64 + 64 * 32 + 32 * N_PAD
    flops = 2 * Bp * w_elems
    bytes_accessed = (
        Bp * 784 * 2                       # x (bf16)
        + w_elems * 2                      # bf16 weights (resident, read once)
        + (128 + 64 + 32 + N_PAD) * 4      # f32 biases
        + Bp * N_PAD * 2)                  # padded bf16 output

    out = pl.pallas_call(
        mlp_kernel,
        out_shape=jax.ShapeDtypeStruct((Bp, N_PAD), jnp.bfloat16),
        grid=grid,
        in_specs=[
            pl.BlockSpec((tb, 784), batch_map),
            full_spec(w1b), full_spec(b1),
            full_spec(w2b), full_spec(b2),
            full_spec(w3b), full_spec(b3),
            full_spec(w4p), full_spec(b4p),
        ],
        out_specs=pl.BlockSpec((tb, N_PAD), batch_map),
        compiler_params=pltpu.CompilerParams(
            dimension_semantics=("parallel",),
            vmem_limit_bytes=32 * 1024 * 1024),
        cost_estimate=pl.CostEstimate(
            flops=flops, transcendentals=0, bytes_accessed=bytes_accessed),
    )(x, w1b, b1, w2b, b2, w3b, b3, w4p, b4p)

    # Keep the original module's semantics: (B, 10) f32 logits.
    return out[:B, :10].astype(jnp.float32)


def init_params(key):
    dims = [28 * 28, 128, 64, 32, 10]
    params = []
    for i in range(4):
        key, kw, kb = jax.random.split(key, 3)
        fan_in = dims[i]
        bound = 1.0 / jnp.sqrt(fan_in)  # matches torch.nn.Linear default init range
        w = jax.random.uniform(kw, (dims[i], dims[i + 1]), jnp.float32, -bound, bound)
        b = jax.random.uniform(kb, (1, dims[i + 1]), jnp.float32, -bound, bound)
        params.append((w, b))
    return params


def reference_forward(x, params):
    # Same numerics as the kernel: bf16 inputs/weights on the MXU with f32
    # accumulation, f32 bias add / ReLU, bf16 final store (then f32).
    h = x.astype(jnp.bfloat16)
    for i, (w, b) in enumerate(params):
        h = jnp.dot(h.astype(jnp.bfloat16), w.astype(jnp.bfloat16),
                    preferred_element_type=jnp.float32) + b
        if i < 3:
            h = jnp.maximum(h, 0.0)
    return h.astype(jnp.bfloat16).astype(jnp.float32)


if __name__ == "__main__":
    key = jax.random.PRNGKey(0)
    kx, kp = jax.random.split(key)

    params = init_params(kp)
    prepared = prepare_params(params)   # one-time weight conversion / padding

    B = 32
    x = jax.random.normal(kx, (B, 28 * 28), jnp.float32)
    x_bf16 = x.astype(jnp.bfloat16)     # activations kept in bf16 (HBM-BW win)
    ref = reference_forward(x, params)

    # Default path (single batch tile at this small B).
    out = jax.block_until_ready(mlp_forward(x_bf16, prepared))
    assert out.shape == (B, 10)
    assert jnp.allclose(out, ref, atol=2e-2, rtol=2e-2)

    # Exercise the batch grid / pipelining path (4 tiles of 8 rows).
    out_tiled = jax.block_until_ready(mlp_forward(x_bf16, prepared, tb=8))
    assert jnp.allclose(out_tiled, ref, atol=2e-2, rtol=2e-2)

    # Non-divisible batch -> padding path (20 rows padded, 3 grid steps of 8).
    out_pad = jax.block_until_ready(mlp_forward(x_bf16[:20], prepared, tb=8))
    assert out_pad.shape == (20, 10)
    assert jnp.allclose(out_pad, ref[:20], atol=2e-2, rtol=2e-2)

    # Larger batch -> tile auto-capped so the grid has >=2 steps (v7x 2-TC path).
    kx2 = jax.random.PRNGKey(1)
    x_big = jax.random.normal(kx2, (256, 28 * 28), jnp.float32)
    ref_big = reference_forward(x_big, params)
    out_big = jax.block_until_ready(mlp_forward(x_big.astype(jnp.bfloat16), prepared))
    assert out_big.shape == (256, 10)
    assert jnp.allclose(out_big, ref_big, atol=2e-2, rtol=2e-2)

    print("KERNEL_OK")
</pallas_src>

<mosaic_0001>
module attributes {stable_mosaic.version = 11 : i64} {
  func.func @mlp_kernel(%arg0: i32, %arg1: memref<32x784xbf16, #tpu.memory_space<vmem>>, %arg2: memref<784x128xbf16, #tpu.memory_space<vmem>>, %arg3: memref<1x128xf32, #tpu.memory_space<vmem>>, %arg4: memref<128x64xbf16, #tpu.memory_space<vmem>>, %arg5: memref<1x64xf32, #tpu.memory_space<vmem>>, %arg6: memref<64x32xbf16, #tpu.memory_space<vmem>>, %arg7: memref<1x32xf32, #tpu.memory_space<vmem>>, %arg8: memref<32x128xbf16, #tpu.memory_space<vmem>>, %arg9: memref<1x128xf32, #tpu.memory_space<vmem>>, %arg10: memref<32x128xbf16, #tpu.memory_space<vmem>>) attributes {dimension_semantics = [#tpu.dimension_semantics<parallel>], iteration_bounds = array<i64: 1>, scalar_prefetch = 0 : i64, scratch_operands = 0 : i64, tpu.core_type = #tpu.core_type<tc>, window_params = [{transform_indices = @transform_0, window_bounds = array<i64: 32, 784>}, {pipeline_mode = #tpu.pipeline_mode<synchronous>, transform_indices = @transform_1, window_bounds = array<i64: 784, 128>}, {pipeline_mode = #tpu.pipeline_mode<synchronous>, transform_indices = @transform_2, window_bounds = array<i64: 1, 128>}, {pipeline_mode = #tpu.pipeline_mode<synchronous>, transform_indices = @transform_3, window_bounds = array<i64: 128, 64>}, {pipeline_mode = #tpu.pipeline_mode<synchronous>, transform_indices = @transform_4, window_bounds = array<i64: 1, 64>}, {pipeline_mode = #tpu.pipeline_mode<synchronous>, transform_indices = @transform_5, window_bounds = array<i64: 64, 32>}, {pipeline_mode = #tpu.pipeline_mode<synchronous>, transform_indices = @transform_6, window_bounds = array<i64: 1, 32>}, {pipeline_mode = #tpu.pipeline_mode<synchronous>, transform_indices = @transform_7, window_bounds = array<i64: 32, 128>}, {pipeline_mode = #tpu.pipeline_mode<synchronous>, transform_indices = @transform_8, window_bounds = array<i64: 1, 128>}, {transform_indices = @transform_9, window_bounds = array<i64: 32, 128>}]} {
    %c0 = arith.constant 0 : index
    %c0_0 = arith.constant 0 : index
    %0 = vector.load %arg1[%c0, %c0_0] : memref<32x784xbf16, #tpu.memory_space<vmem>>, vector<32x784xbf16>
    %c0_1 = arith.constant 0 : index
    %c0_2 = arith.constant 0 : index
    %1 = vector.load %arg2[%c0_1, %c0_2] : memref<784x128xbf16, #tpu.memory_space<vmem>>, vector<784x128xbf16>
    %cst = arith.constant dense<0.000000e+00> : vector<32x128xf32>
    %2 = tpu.matmul %0, %1, %cst {dimension_numbers = #tpu.dot_dimension_numbers<[1], [0], [0], [1], [0, 0, 1, 1], [], []>} : vector<32x784xbf16>, vector<784x128xbf16>, vector<32x128xf32> -> vector<32x128xf32>
    %c0_3 = arith.constant 0 : index
    %c0_4 = arith.constant 0 : index
    %3 = vector.load %arg3[%c0_3, %c0_4] : memref<1x128xf32, #tpu.memory_space<vmem>>, vector<1x128xf32>
    %4 = vector.broadcast %3 : vector<1x128xf32> to vector<32x128xf32>
    %5 = arith.addf %2, %4 : vector<32x128xf32>
    %cst_5 = arith.constant 0.000000e+00 : f32
    %6 = vector.broadcast %cst_5 : f32 to vector<32x128xf32>
    %7 = arith.maximumf %5, %6 : vector<32x128xf32>
    %8 = arith.truncf %7 : vector<32x128xf32> to vector<32x128xbf16>
    %c0_6 = arith.constant 0 : index
    %c0_7 = arith.constant 0 : index
    %9 = vector.load %arg4[%c0_6, %c0_7] : memref<128x64xbf16, #tpu.memory_space<vmem>>, vector<128x64xbf16>
    %cst_8 = arith.constant dense<0.000000e+00> : vector<32x64xf32>
    %10 = tpu.matmul %8, %9, %cst_8 {dimension_numbers = #tpu.dot_dimension_numbers<[1], [0], [0], [1], [0, 0, 1, 1], [], []>} : vector<32x128xbf16>, vector<128x64xbf16>, vector<32x64xf32> -> vector<32x64xf32>
    %c0_9 = arith.constant 0 : index
    %c0_10 = arith.constant 0 : index
    %11 = vector.load %arg5[%c0_9, %c0_10] : memref<1x64xf32, #tpu.memory_space<vmem>>, vector<1x64xf32>
    %12 = vector.broadcast %11 : vector<1x64xf32> to vector<32x64xf32>
    %13 = arith.addf %10, %12 : vector<32x64xf32>
    %cst_11 = arith.constant 0.000000e+00 : f32
    %14 = vector.broadcast %cst_11 : f32 to vector<32x64xf32>
    %15 = arith.maximumf %13, %14 : vector<32x64xf32>
    %16 = arith.truncf %15 : vector<32x64xf32> to vector<32x64xbf16>
    %c0_12 = arith.constant 0 : index
    %c0_13 = arith.constant 0 : index
    %17 = vector.load %arg6[%c0_12, %c0_13] : memref<64x32xbf16, #tpu.memory_space<vmem>>, vector<64x32xbf16>
    %cst_14 = arith.constant dense<0.000000e+00> : vector<32x32xf32>
    %18 = tpu.matmul %16, %17, %cst_14 {dimension_numbers = #tpu.dot_dimension_numbers<[1], [0], [0], [1], [0, 0, 1, 1], [], []>} : vector<32x64xbf16>, vector<64x32xbf16>, vector<32x32xf32> -> vector<32x32xf32>
    %c0_15 = arith.constant 0 : index
    %c0_16 = arith.constant 0 : index
    %19 = vector.load %arg7[%c0_15, %c0_16] : memref<1x32xf32, #tpu.memory_space<vmem>>, vector<1x32xf32>
    %20 = vector.broadcast %19 : vector<1x32xf32> to vector<32x32xf32>
    %21 = arith.addf %18, %20 : vector<32x32xf32>
    %cst_17 = arith.constant 0.000000e+00 : f32
    %22 = vector.broadcast %cst_17 : f32 to vector<32x32xf32>
    %23 = arith.maximumf %21, %22 : vector<32x32xf32>
    %24 = arith.truncf %23 : vector<32x32xf32> to vector<32x32xbf16>
    %c0_18 = arith.constant 0 : index
    %c0_19 = arith.constant 0 : index
    %25 = vector.load %arg8[%c0_18, %c0_19] : memref<32x128xbf16, #tpu.memory_space<vmem>>, vector<32x128xbf16>
    %cst_20 = arith.constant dense<0.000000e+00> : vector<32x128xf32>
    %26 = tpu.matmul %24, %25, %cst_20 {dimension_numbers = #tpu.dot_dimension_numbers<[1], [0], [0], [1], [0, 0, 1, 1], [], []>} : vector<32x32xbf16>, vector<32x128xbf16>, vector<32x128xf32> -> vector<32x128xf32>
    %c0_21 = arith.constant 0 : index
    %c0_22 = arith.constant 0 : index
    %27 = vector.load %arg9[%c0_21, %c0_22] : memref<1x128xf32, #tpu.memory_space<vmem>>, vector<1x128xf32>
    %28 = vector.broadcast %27 : vector<1x128xf32> to vector<32x128xf32>
    %29 = arith.addf %26, %28 : vector<32x128xf32>
    %30 = arith.truncf %29 : vector<32x128xf32> to vector<32x128xbf16>
    %c0_23 = arith.constant 0 : index
    %c0_24 = arith.constant 0 : index
    %31 = vector.load %arg10[%c0_23, %c0_24] : memref<32x128xbf16, #tpu.memory_space<vmem>>, vector<32x128xbf16>
    tpu.vector_store %arg10[%c0_23, %c0_24], %30 {strides = array<i32>} : memref<32x128xbf16, #tpu.memory_space<vmem>>, vector<32x128xbf16>,
    return
  }
  func.func @transform_0(%arg0: i32) -> (i32, i32) {
    %c0_i32 = arith.constant 0 : i32
    %c0_i32_0 = arith.constant 0 : i32
    return %arg0, %c0_i32 : i32, i32
  }
  func.func @transform_1(%arg0: i32) -> (i32, i32) {
    %c0_i32 = arith.constant 0 : i32
    %c0_i32_0 = arith.constant 0 : i32
    %c0_i32_1 = arith.constant 0 : i32
    return %c0_i32, %c0_i32_0 : i32, i32
  }
  func.func @transform_2(%arg0: i32) -> (i32, i32) {
    %c0_i32 = arith.constant 0 : i32
    %c0_i32_0 = arith.constant 0 : i32
    %c0_i32_1 = arith.constant 0 : i32
    return %c0_i32, %c0_i32_0 : i32, i32
  }
  func.func @transform_3(%arg0: i32) -> (i32, i32) {
    %c0_i32 = arith.constant 0 : i32
    %c0_i32_0 = arith.constant 0 : i32
    %c0_i32_1 = arith.constant 0 : i32
    return %c0_i32, %c0_i32_0 : i32, i32
  }
  func.func @transform_4(%arg0: i32) -> (i32, i32) {
    %c0_i32 = arith.constant 0 : i32
    %c0_i32_0 = arith.constant 0 : i32
    %c0_i32_1 = arith.constant 0 : i32
    return %c0_i32, %c0_i32_0 : i32, i32
  }
  func.func @transform_5(%arg0: i32) -> (i32, i32) {
    %c0_i32 = arith.constant 0 : i32
    %c0_i32_0 = arith.constant 0 : i32
    %c0_i32_1 = arith.constant 0 : i32
    return %c0_i32, %c0_i32_0 : i32, i32
  }
  func.func @transform_6(%arg0: i32) -> (i32, i32) {
    %c0_i32 = arith.constant 0 : i32
    %c0_i32_0 = arith.constant 0 : i32
    %c0_i32_1 = arith.constant 0 : i32
    return %c0_i32, %c0_i32_0 : i32, i32
  }
  func.func @transform_7(%arg0: i32) -> (i32, i32) {
    %c0_i32 = arith.constant 0 : i32
    %c0_i32_0 = arith.constant 0 : i32
    %c0_i32_1 = arith.constant 0 : i32
    return %c0_i32, %c0_i32_0 : i32, i32
  }
  func.func @transform_8(%arg0: i32) -> (i32, i32) {
    %c0_i32 = arith.constant 0 : i32
    %c0_i32_0 = arith.constant 0 : i32
    %c0_i32_1 = arith.constant 0 : i32
    return %c0_i32, %c0_i32_0 : i32, i32
  }
  func.func @transform_9(%arg0: i32) -> (i32, i32) {
    %c0_i32 = arith.constant 0 : i32
    %c0_i32_0 = arith.constant 0 : i32
    return %arg0, %c0_i32 : i32, i32
  }
}

</mosaic_0001>

<bundles_post_ra>
// kernel: mlp_forward.1
= control target key start
LH: loop header
LB: loop body
LE: loop exit
PB: predicated region body
PF: predicated region fallthrough
CT: control target
= control target key end

     0   :  { %14 = vsyncpa [#allocation3], 0  ;;  %s1655_s0 = inlined_call_operand.vmem [shape: bf16[32,784], index: 0, kind: input, shape index: {}]   ;;  %s1656_s1 = inlined_call_operand.hbm [shape: bf16[784,128], index: 1, kind: input, shape index: {}]   ;;  %s1657_s2 = inlined_call_operand.vmem [shape: f32[1,128], index: 2, kind: input, shape index: {}]   ;;  %s1658_s3 = inlined_call_operand.vmem [shape: bf16[128,64], index: 3, kind: input, shape index: {}]   ;;  %s1659_s4 = inlined_call_operand.vmem [shape: f32[1,64], index: 4, kind: input, shape index: {}]   ;;  %s1660_s5 = inlined_call_operand.vmem [shape: bf16[64,32], index: 5, kind: input, shape index: {}]   ;;  %s1661_s6 = inlined_call_operand.vmem [shape: f32[1,32], index: 6, kind: input, shape index: {}]   ;;  %s1662_s7 = inlined_call_operand.hbm [shape: bf16[32,128], index: 7, kind: input, shape index: {}]   ;;  %s1663_s8 = inlined_call_operand.vmem [shape: f32[1,128], index: 8, kind: input, shape index: {}]   ;;  %s1664_s9 = inlined_call_operand.vmem [shape: bf16[32,128], index: 9, kind: output, shape index: {}]  }
   0x1   :  { %15 = vsyncpa [#allocation5], 0  ;;  %s1481_s30 = smov [#allocation2]   ;;  %s1433_s13 = scalar_lea.hbm %s1656_s1, 6272 }
   0x2   :  { %s23_s10 = sshll.u32 %s1481_s30, 4  ;;  %p1434_p0 = scmp.ne.s32.totalorder %s1656_s1, %s1433_s13  ;;  %s24_s10 = int_to_ptr.vmem [resolvable:$true] %s23_s10 }
   0x3   :  { %p1437_p1 = scmp.lt.u32.totalorder %s1433_s13, %s1656_s1 }
   0x5   :  { %p1439_p2 = pnand %p1437_p1, %p1434_p0 }
   0x7   :  { %1442 = shalt.err (!%p1439_p2)
}
   0x8   :  { %s1443_s18 = scalar_lea.vmem %s24_s10, 6272  ;;  %p1448_p4 = scmp.lt.s32.totalorder %s24_s10, %s24_s10 }
   0x9   :  { %p1444_p3 = scmp.ne.s32.totalorder %s24_s10, %s1443_s18  ;;  %p1449_p5 = scmp.lt.s32.totalorder %s1443_s18, %s1443_s18 }
   0xb   :  { %p1450_p6 = por %p1449_p5, %p1448_p4 }
   0xd   :  { %p1451_p7 = pnand %p1450_p6, %p1444_p3 }
   0xf   :  { %1454 = shalt.err (!%p1451_p7)
}
  0x10   :  { %s1482_s19 = smov 64   ;;  %s1483_s20 = smov 4  }
  0x11   :  { %29 = dma.hbm_to_vmem [thread:$0]  %s1656_s1, 6272, %s24_s10, [#allocation3], %s1482_s19, %s1482_s19, %s1483_s20  }
  0x12   :  { %s1484_s23 = smov [#allocation4]   ;;  %s1455_s27 = scalar_lea.hbm %s1662_s7, 256 }
  0x13   :  { %s45_s24 = sshll.u32 %s1484_s23, 4  ;;  %p1456_p8 = scmp.ne.s32.totalorder %s1662_s7, %s1455_s27  ;;  %s46_s24 = int_to_ptr.vmem [resolvable:$true] %s45_s24 }
  0x14   :  { %p1459_p9 = scmp.lt.u32.totalorder %s1455_s27, %s1662_s7 }
  0x16   :  { %p1461_p10 = pnand %p1459_p9, %p1456_p8 }
  0x18   :  { %1464 = shalt.err (!%p1461_p10)
}
  0x19   :  { %s1465_s12 = scalar_lea.vmem %s46_s24, 256  ;;  %p1470_p12 = scmp.lt.s32.totalorder %s46_s24, %s46_s24 }
  0x1a   :  { %p1466_p11 = scmp.ne.s32.totalorder %s46_s24, %s1465_s12  ;;  %p1471_p13 = scmp.lt.s32.totalorder %s1465_s12, %s1465_s12 }
  0x1c   :  { %p1472_p0 = por %p1471_p13, %p1470_p12 }
  0x1e   :  { %p1473_p1 = pnand %p1472_p0, %p1466_p11 }
  0x20   :  { %1476 = shalt.err (!%p1473_p1)
}
  0x21   :  { %51 = dma.hbm_to_vmem [thread:$0]  %s1662_s7, 256, %s46_s24, [#allocation5], %s1482_s19, %s1482_s19, %s1483_s20  }
  0x22   :  { %1477 = dma.done.wait [#allocation3], 6272  }
  0x23   :  { %1478 = vsyncadd [#allocation3], 4294961024 }
  0x24   :  { %1479 = dma.done.wait [#allocation5], 256  }
  0x25   :  { %1480 = vsyncadd [#allocation5], 4294967040  ;;  %v1350_v0 = vld [vmem:[#allocation2 + $0x40] sm:$0xff]   ;;  %v1354_v4 = vld [vmem:[#allocation2 + $0x48] sm:$0xff]   ;;  %vm546_vm0 = vcmask 130048   ;;  %vm920_vm1 = vcmask 523264  }
  0x26   :  { %v1351_v1 = vld [vmem:[#allocation2] sm:$0xff]   ;;  %1193 = vmatprep.subr.bf16.mxu0 %v1350_v0  ;;  %v1355_v5 = vld [vmem:[#allocation2 + $0x8] sm:$0xff]   ;;  %v1358_v8 = vld [vmem:[#allocation2 + $0x50] sm:$0xff]   ;;  %vm1005_vm2 = vcmask 261120  }
  0x27   :  { %v1352_v2 = vld [vmem:[#allocation2 + $0xc0] sm:$0xff]   ;;  %1194 = vmatpush3.bf16.msra.mxu0 %v1351_v1  ;;  %v1356_v6 = vld [vmem:[#allocation2 + $0xc8] sm:$0xff]   ;;  %v1359_v9 = vld [vmem:[#allocation2 + $0x10] sm:$0xff]  }
  0x28   :  { %v1353_v3 = vld [vmem:[#allocation2 + $0x80] sm:$0xff]   ;;  %1221 = vmatprep.subr.bf16.mxu1 %v1352_v2  ;;  %1195 = vmatprep.subr.bf16.mxu0 %v1354_v4  ;;  %v1357_v7 = vld [vmem:[#allocation2 + $0x88] sm:$0xff]   ;;  %v1360_v10 = vld [vmem:[#allocation2 + $0xd0] sm:$0xff]  }
  0x29   :  { %1222 = vmatpush3.bf16.msra.mxu1 %v1353_v3  ;;  %v1361_v11 = vld [vmem:[#allocation2 + $0x90] sm:$0xff]   ;;  %v1362_v12 = vld [vmem:[#allocation2 + $0x58] sm:$0xff]   ;;  %v1366_v16 = vld [vmem:[#allocation2 + $0x60] sm:$0xff]  }
  0x2a   :  { %1223 = vmatprep.subr.bf16.mxu1 %v1356_v6  ;;  %v1363_v13 = vld [vmem:[#allocation2 + $0x18] sm:$0xff]   ;;  %v1367_v17 = vld [vmem:[#allocation2 + $0x20] sm:$0xff]   ;;  %v1370_v20 = vld [vmem:[#allocation2 + $0x68] sm:$0xff]  }
  0x2b   :  { %1196 = vmatpush3.bf16.msra.mxu0 %v1355_v5  ;;  %v1364_v14 = vld [vmem:[#allocation2 + $0xd8] sm:$0xff]   ;;  %v1368_v18 = vld [vmem:[#allocation2 + $0xe0] sm:$0xff]   ;;  %v1371_v21 = vld [vmem:[#allocation2 + $0x28] sm:$0xff]  }
  0x2c   :  { %1197 = vmatprep.subr.bf16.mxu0 %v1358_v8  ;;  %v1365_v15 = vld [vmem:[#allocation2 + $0x98] sm:$0xff]   ;;  %v1369_v19 = vld [vmem:[#allocation2 + $0xa0] sm:$0xff]   ;;  %v1372_v22 = vld [vmem:[#allocation2 + $0xe8] sm:$0xff]  }
  0x2d   :  { %1224 = vmatpush3.bf16.msra.mxu1 %v1357_v7  ;;  %v1373_v23 = vld [vmem:[#allocation2 + $0xa8] sm:$0xff]   ;;  %v1374_v24 = vld [vmem:[#allocation2 + $0x70] sm:$0xff]   ;;  %v1378_v28 = vld [vmem:[#allocation2 + $0x78] sm:$0xff]  }
  0x2e   :  { %1225 = vmatprep.subr.bf16.mxu1 %v1360_v10  ;;  %v1375_v25 = vld [vmem:[#allocation2 + $0x30] sm:$0xff]   ;;  %v1379_v29 = vld [vmem:[#allocation2 + $0x38] sm:$0xff]   ;;  %v1383_v32 = vld [vmem:[%s1655_s0 + $0x4] ss:$28 sps:$4 sm:$0xff]  }
  0x2f   :  { %1198 = vmatpush3.bf16.msra.mxu0 %v1359_v9  ;;  %v1376_v26 = vld [vmem:[#allocation2 + $0xf0] sm:$0xff]   ;;  %v1380_v30 = vld [vmem:[#allocation2 + $0xf8] sm:$0xff]   ;;  %585 = vmatprep.mubr.bf16.mxu0 %v1383_v32  ;;  %v1385_v34 = vld [vmem:[#allocation2 + $0x140] sm:$0xff]  }
  0x30   :  { %1199 = vmatprep.subr.bf16.mxu0 %v1362_v12  ;;  %v1377_v27 = vld [vmem:[#allocation2 + $0xb0] sm:$0xff]   ;;  %v1381_v31 = vld [vmem:[%s1655_s0] ss:$28 sps:$4 sm:$0xff]   ;;  %v1386_v35 = vld [vmem:[%s1655_s0 + $0x8] ss:$28 sps:$4 sm:$0xff]  }
  0x31   :  { %1226 = vmatpush3.bf16.msra.mxu1 %v1361_v11  ;;  %v1384_v33 = vld [vmem:[#allocation2 + $0xb8] sm:$0xff]   ;;  %v1388_v36 = vld [vmem:[%s1655_s0 + $0xc] ss:$28 sps:$4 sm:$0xff]   ;;  %v1389_v37 = vld [vmem:[#allocation2 + $0x100] sm:$0xff]  }
  0x32   :  { %1227 = vmatprep.subr.bf16.mxu1 %v1364_v14  ;;  %634 = vmatprep.mubr.bf16.mxu1 %v1388_v36  ;;  %v1390_v38 = vld [vmem:[#allocation2 + $0x148] sm:$0xff]   ;;  %v1392_v40 = vld [vmem:[#allocation2 + $0x150] sm:$0xff]   ;;  %v1394_v42 = vld [vmem:[#allocation2 + $0x158] sm:$0xff]  }
  0x33   :  { %1200 = vmatpush3.bf16.msra.mxu0 %v1363_v13  ;;  %v1391_v39 = vld [vmem:[#allocation2 + $0x108] sm:$0xff]   ;;  %v1393_v41 = vld [vmem:[#allocation2 + $0x110] sm:$0xff]   ;;  %v1398_v43 = vld [vmem:[%s1655_s0 + $0x3c] ss:$28 sps:$4 sm:$0xff]  }
  0x34   :  { %1201 = vmatprep.subr.bf16.mxu0 %v1366_v16  ;;  %v1395_v44 = vld [vmem:[#allocation2 + $0x118] sm:$0xff]   ;;  %v1396_v46 = vld [vmem:[#allocation2 + $0x160] sm:$0xff]   ;;  %v1400_v50 = vld [vmem:[#allocation2 + $0x168] sm:$0xff]  }
  0x35   :  { %1228 = vmatpush3.bf16.msra.mxu1 %v1365_v15  ;;  %v1401_v45 = vld [vmem:[%s1655_s0 + $0x38] ss:$28 sps:$4 sm:$0xff]   ;;  %v1403_v47 = vld [vmem:[%s1655_s0 + $0x44] ss:$28 sps:$4 sm:$0xff]   ;;  %v1402_v52 = vld [vmem:[#allocation2 + $0x128] sm:$0xff]  }
  0x36   :  { %1229 = vmatprep.subr.bf16.mxu1 %v1368_v18  ;;  %v1405_v48 = vld [vmem:[%s1655_s0 + $0x40] ss:$28 sps:$4 sm:$0xff]   ;;  %v1406_v53 = vld [vmem:[#allocation2 + $0x170] sm:$0xff]   ;;  %v1416_v61 = vld [vmem:[%s1655_s0 + $0x4c] ss:$28 sps:$4 sm:$0xff]  }
  0x37   :  { %1202 = vmatpush3.bf16.msra.mxu0 %v1367_v17  ;;  %v1397_v49 = vld [vmem:[#allocation2 + $0x120] sm:$0xff]   ;;  %v1413_v54 = vld [vmem:[%s1655_s0 + $0x14] ss:$28 sps:$4 sm:$0xff]   ;;  %v1409_v58 = vld [vmem:[#allocation2 + $0x178] sm:$0xff]  }
  0x38   :  { %1203 = vmatprep.subr.bf16.mxu0 %v1370_v20  ;;  %v1408_v51 = vld [vmem:[#allocation2 + $0x180] sm:$0xff]   ;;  %v1414_v55 = vld [vmem:[%s1655_s0 + $0x18] ss:$28 sps:$4 sm:$0xff]   ;;  %v1415_v56 = vld [vmem:[%s1655_s0 + $0x50] ss:$28 sps:$4 sm:$0xff]  }
  0x39   :  { %1230 = vmatpush3.bf16.msra.mxu1 %v1369_v19  ;;  %v1407_v57 = vld [vmem:[#allocation2 + $0x130] sm:$0xff]   ;;  %v1410_v59 = vld [vmem:[#allocation2 + $0x138] sm:$0xff]   ;;  %v1418_v62 = vld [vmem:[%s1655_s0 + $0x48] ss:$28 sps:$4 sm:$0xff]  }
  0x3a   :  { %1231 = vmatprep.subr.bf16.mxu1 %v1372_v22  ;;  %v1411_v60 = vld [vmem:[%s1655_s0 + $0x10] ss:$28 sps:$4 sm:$0xff]   ;;  %v1419_v63 = vld [vmem:[%s1658_s3] sm:$0xff]   ;;  %v1422_v2 = vld [vmem:[%s1658_s3 + $0x18] sm:$0xff]  }
  0x3b   :  { %1204 = vmatpush3.bf16.msra.mxu0 %v1371_v21  ;;  %v1420_v0 = vld [vmem:[%s1658_s3 + $0x8] sm:$0xff]   ;;  %v1421_v1 = vld [vmem:[%s1658_s3 + $0x10] sm:$0xff]   ;;  %v1423_v3 = vld [vmem:[%s1658_s3 + $0x20] sm:$0xff]  }
  0x3c   :  { %1205 = vmatprep.subr.bf16.mxu0 %v1374_v24  ;;  %v1424_v4 = vld [vmem:[%s1658_s3 + $0x28] sm:$0xff]   ;;  %v1425_v5 = vld [vmem:[%s1658_s3 + $0x30] sm:$0xff]   ;;  %v1426_v6 = vld [vmem:[%s1658_s3 + $0x38] sm:$0xff]  }
  0x3d   :  { %1232 = vmatpush3.bf16.msra.mxu1 %v1373_v23  ;;  %v1427_v7 = vld [vmem:[%s1660_s5] sm:$0xff]   ;;  %v1428_v8 = vld [vmem:[%s1660_s5 + $0x8] sm:$0xff]  }
  0x3e   :  { %1233 = vmatprep.subr.bf16.mxu1 %v1376_v26  ;;  %v1087_v10 = vld [vmem:[%s1657_s2] ss:$0 sm:$0xff] }
  0x3f   :  { %1206 = vmatpush3.bf16.msra.mxu0 %v1375_v25 }
  0x40   :  { %1207 = vmatprep.subr.bf16.mxu0 %v1378_v28 }
  0x41   :  { %1234 = vmatpush3.bf16.msra.mxu1 %v1377_v27 }
  0x42   :  { %1235 = vmatprep.subr.bf16.mxu1 %v1380_v30 }
  0x43   :  { %1208 = vmatpush3.bf16.msra.mxu0 %v1379_v29 }
  0x44   :  { %1249 = vmatprep.subr.bf16.mxu0 %v1385_v34 }
  0x45   :  { %1236 = vmatpush3.bf16.msra.mxu1 %v1384_v33 }
  0x46   :  { %586 = vmatmul.mubr.bf16.vlgmr.msra.gmra.mrb[0].mxu0 %v1381_v31  ;;  %1300 = vmatprep.subr.bf16.mxu1 %v1408_v51 }
  0x47   :  { %1250 = vmatpush3.bf16.msra.mxu0 %v1389_v37  ;;  %593 = vmatprep.mubr.bf16.mxu0 %v1398_v43 }
  0x48   :  { %635 = vmatmul.mubr.bf16.vlgmr.msra.gmra.mrb[0].mxu1 %v1386_v35  ;;  %1251 = vmatprep.subr.bf16.mxu0 %v1390_v38 }
  0x49   :  { %642 = vmatprep.mubr.bf16.mxu1 %v1403_v47  ;;  %1301 = vmatpush3.bf16.msra.mxu1 %v1408_v51 }
  0x4a   :  { %1306 = vmatprep.subr.bf16.mxu1 %v1419_v63 }
  0x4b   :  { %1252 = vmatpush3.bf16.msra.mxu0 %v1391_v39 }
  0x4c   :  { %1253 = vmatprep.subr.bf16.mxu0 %v1392_v40 }
  0x4e   :  { %594 = vmatmul.mubr.bf16.gmra.mrb[4].mxu0 %v1401_v45 }
  0x4f   :  { %1254 = vmatpush3.bf16.msra.mxu0 %v1393_v41  ;;  %683 = vmatprep.mubr.bf16.mxu0 %v1413_v54 }
  0x50   :  { %1255 = vmatprep.subr.bf16.mxu0 %v1394_v42  ;;  %643 = vmatmul.mubr.bf16.gmra.mrb[4].mxu1 %v1405_v48 }
  0x51   :  { %1302 = vmatprep.mubr.msk.bf16.mxu1 %vm546_vm0, %v1414_v55 }
  0x53   :  { %1256 = vmatpush3.bf16.msra.mxu0 %v1395_v44 }
  0x54   :  { %1257 = vmatprep.subr.bf16.mxu0 %v1396_v46 }
  0x57   :  { %1258 = vmatpush3.bf16.msra.mxu0 %v1397_v49 }
  0x58   :  { %1259 = vmatprep.subr.bf16.mxu0 %v1400_v50  ;;  %1303 = vmatmul.mubr.msk.bf16.vlgmr.msra.gmra.mrb[8].mxu1 %vm546_vm0, %v1415_v56 }
  0x59   :  { %1307 = vmatpush3.bf16.msra.mxu1 %v1419_v63 }
  0x5a   :  { %1308 = vmatprep.subr.bf16.mxu1 %v1420_v0 }
  0x5b   :  { %1260 = vmatpush3.bf16.msra.mxu0 %v1402_v52 }
  0x5c   :  { %1261 = vmatprep.subr.bf16.mxu0 %v1406_v53 }
  0x5d   :  { %1309 = vmatpush3.bf16.msra.mxu1 %v1420_v0 }
  0x5e   :  { %1310 = vmatprep.subr.bf16.mxu1 %v1421_v1 }
  0x5f   :  { %1262 = vmatpush3.bf16.msra.mxu0 %v1407_v57 }
  0x60   :  { %1263 = vmatprep.subr.bf16.mxu0 %v1409_v58 }
  0x61   :  { %1311 = vmatpush3.bf16.msra.mxu1 %v1421_v1 }
  0x62   :  { %1312 = vmatprep.subr.bf16.mxu1 %v1422_v2 }
  0x63   :  { %1264 = vmatpush3.bf16.msra.mxu0 %v1410_v59 }
  0x64   :  { %1326 = vmatprep.subr.bf16.mxu0 %v1427_v7 }
  0x65   :  { %1313 = vmatpush3.bf16.msra.mxu1 %v1422_v2 }
  0x66   :  { %684 = vmatmul.mubr.bf16.vlgmr.msra.gmra.mrb[8].mxu0 %v1411_v60  ;;  %1314 = vmatprep.subr.bf16.mxu1 %v1423_v3 }
  0x67   :  { %691 = vmatprep.mubr.bf16.mxu0 %v1416_v61  ;;  %1327 = vmatpush3.bf16.msra.mxu0 %v1427_v7 }
  0x68   :  { %1328 = vmatprep.subr.bf16.mxu0 %v1428_v8 }
  0x69   :  { %1315 = vmatpush3.bf16.msra.mxu1 %v1423_v3 }
  0x6a   :  { %1316 = vmatprep.subr.bf16.mxu1 %v1424_v4 }
  0x6b   :  { %1329 = vmatpush3.bf16.msra.mxu0 %v1428_v8  ;;  %v1429_v8 = vld [vmem:[%s1660_s5 + $0x10] sm:$0xff]  }
  0x6c   :  { %1330 = vmatprep.subr.bf16.mxu0 %v1429_v8 }
  0x6d   :  { %1317 = vmatpush3.bf16.msra.mxu1 %v1424_v4 }
  0x6e   :  { %692 = vmatmul.mubr.bf16.gmra.mrb[12].mxu0 %v1418_v62  ;;  %1318 = vmatprep.subr.bf16.mxu1 %v1425_v5 }
  0x6f   :  { %1331 = vmatpush3.bf16.msra.mxu0 %v1429_v8 }
  0x71   :  { %1319 = vmatpush3.bf16.msra.mxu1 %v1425_v5 }
  0x72   :  { %1320 = vmatprep.subr.bf16.mxu1 %v1426_v6 }
  0x75   :  { %1321 = vmatpush3.bf16.msra.mxu1 %v1426_v6 }
 0x119   :  { %v1209_v9 = vpop.f32.mrb[0].mxu0 }
 0x11a   :  { %v1210_v11 = vpop.f32.mrb[1].mxu0 }
 0x11b   :  { %v1211_v12 = vadd.f32 %v1210_v11, %v1209_v9  ;;  %v1212_v13 = vpop.f32.mrb[2].mxu0  ;;  %v1237_v14 = vpop.f32.mrb[0].mxu1  ;;  %v1430_v9 = vld [vmem:[%s1660_s5 + $0x18] sm:$0xff]  }
 0x11c   :  { %v1213_v15 = vpop.f32.mrb[3].mxu0  ;;  %v1238_v18 = vpop.f32.mrb[1].mxu1  ;;  %1332 = vmatprep.subr.bf16.mxu0 %v1430_v9 }
 0x11d   :  { %v588_v16 = vadd.f32 %v1211_v12, %v1087_v10  ;;  %v1214_v17 = vadd.f32 %v1213_v15, %v1212_v13  ;;  %v1239_v19 = vadd.f32 %v1238_v18, %v1237_v14  ;;  %v1240_v20 = vpop.f32.mrb[2].mxu1  ;;  %1333 = vmatpush3.bf16.msra.mxu0 %v1430_v9 }
 0x11e   :  { %v1241_v22 = vpop.f32.mrb[3].mxu1 }
 0x11f   :  { %v591_v21 = vadd.f32 %v1214_v17, %v1087_v10  ;;  %v637_v23 = vadd.f32 %v1239_v19, %v588_v16  ;;  %v1242_v24 = vadd.f32 %v1241_v22, %v1240_v20 }
 0x121   :  { %v640_v25 = vadd.f32 %v1242_v24, %v591_v21  ;;  %v1215_v26 = vpop.f32.mrb[4].mxu0 }
 0x122   :  { %v1216_v27 = vpop.f32.mrb[5].mxu0 }
 0x123   :  { %v1217_v28 = vadd.f32 %v1216_v27, %v1215_v26  ;;  %v1218_v29 = vpop.f32.mrb[6].mxu0  ;;  %v1243_v30 = vpop.f32.mrb[4].mxu1  ;;  %v1432_v26 = vld [vmem:[#allocation4 + $0x8] sm:$0xff]   ;;  %v1162_v27 = vld [vmem:[%s1661_s6] ss:$0 sm:$0xff] }
 0x124   :  { %v1219_v31 = vpop.f32.mrb[7].mxu0  ;;  %v1244_v34 = vpop.f32.mrb[5].mxu1 }
 0x125   :  { %v596_v32 = vadd.f32 %v1217_v28, %v1087_v10  ;;  %v1220_v33 = vadd.f32 %v1219_v31, %v1218_v29  ;;  %v1245_v35 = vadd.f32 %v1244_v34, %v1243_v30  ;;  %v1246_v36 = vpop.f32.mrb[6].mxu1 }
 0x126   :  { %v1247_v38 = vpop.f32.mrb[7].mxu1 }
 0x127   :  { %v599_v37 = vadd.f32 %v1220_v33, %v1087_v10  ;;  %v645_v39 = vadd.f32 %v1245_v35, %v596_v32  ;;  %v1248_v40 = vadd.f32 %v1247_v38, %v1246_v36  ;;  %v1153_v10 = vld [vmem:[%s1659_s4] ss:$0 sm:$0xff] }
 0x129   :  { %v648_v41 = vadd.f32 %v1248_v40, %v599_v37 }
 0x12b   :  { %v1304_v42 = vpop.f32.mrb[8].mxu1 }
 0x12c   :  { %v734_v43 = vpop.f32.mrb[9].mxu1 }
 0x12d   :  { %v1305_v44 = vpop.f32.mrb[10].mxu1 }
 0x12e   :  { %v737_v45 = vpop.f32.mrb[11].mxu1 }
 0x139   :  { %v1265_v46 = vpop.f32.mrb[8].mxu0 }
 0x13a   :  { %v1266_v47 = vpop.f32.mrb[9].mxu0 }
 0x13b   :  { %v1267_v48 = vadd.f32 %v1266_v47, %v1265_v46  ;;  %v1268_v49 = vpop.f32.mrb[10].mxu0 }
 0x13c   :  { %v1269_v50 = vpop.f32.mrb[11].mxu0 }
 0x13d   :  { %v1270_v51 = vadd.f32 %v1269_v50, %v1268_v49  ;;  %v686_v52 = vadd.f32 %v1267_v48, %v637_v23 }
 0x13f   :  { %v735_v53 = vadd.f32 %v734_v43, %v686_v52  ;;  %v689_v54 = vadd.f32 %v1270_v51, %v640_v25  ;;  %v1431_v25 = vld [vmem:[#allocation4] sm:$0xff]   ;;  %v1169_v43 = vld [vmem:[%s1663_s8] ss:$0 sm:$0xff] }
 0x140   :  { %1338 = vmatprep.subr.bf16.mxu0 %v1431_v25 }
 0x141   :  { %v738_v55 = vadd.f32 %v737_v45, %v689_v54  ;;  %v1271_v56 = vpop.f32.mrb[12].mxu0  ;;  %v749_v58 = vmax.f32 %v735_v53, 0.0 }
 0x142   :  { %v1272_v57 = vpop.f32.mrb[13].mxu0 }
 0x143   :  { %v750_v59 = vmax.f32 %v738_v55, 0.0  ;;  %v1273_v60 = vadd.f32 %v1272_v57, %v1271_v56  ;;  %v1274_v61 = vpop.f32.mrb[14].mxu0 }
 0x144   :  { %v1275_v62 = vpop.f32.mrb[15].mxu0 }
 0x145   :  { %v753_v63 = vpack.c.bf16 %v750_v59, %v749_v58  ;;  %v694_v0 = vadd.f32 %v1273_v60, %v645_v39  ;;  %v1276_v1 = vadd.f32 %v1275_v62, %v1274_v61 }
 0x147   :  { %v743_v2 = vadd.f32 %v1304_v42, %v694_v0  ;;  %v697_v3 = vadd.f32 %v1276_v1, %v648_v41  ;;  %1322 = vmatprep.mubr.bf16.mxu1 %v753_v63 }
 0x149   :  { %v746_v4 = vadd.f32 %v1305_v44, %v697_v3  ;;  %v751_v5 = vmax.f32 %v743_v2, 0.0 }
 0x14b   :  { %v752_v6 = vmax.f32 %v746_v4, 0.0 }
 0x14d   :  { %v754_v7 = vpack.c.bf16 %v752_v6, %v751_v5 }
 0x14f   :  { %1323 = vmatmul.mubr.bf16.vlgmr.msra.gmra.mrb[12].mxu1 %v754_v7 }
 0x222   :  { %v1324_v11 = vpop.f32.mrb[12].mxu1 }
 0x223   :  { %v869_v12 = vadd.f32 %v1324_v11, %v1153_v10  ;;  %v860_v13 = vpop.f32.mrb[13].mxu1 }
 0x224   :  { %v861_v14 = vadd.f32 %v1153_v10, %v860_v13  ;;  %v1325_v15 = vpop.f32.mrb[14].mxu1 }
 0x225   :  { %v872_v16 = vadd.f32 %v1325_v15, %v1153_v10  ;;  %v863_v17 = vpop.f32.mrb[15].mxu1  ;;  %v877_v19 = vmax.f32 %v869_v12, 0.0 }
 0x226   :  { %v864_v18 = vadd.f32 %v1153_v10, %v863_v17  ;;  %v875_v21 = vmax.f32 %v861_v14, 0.0 }
 0x227   :  { %v878_v20 = vmax.f32 %v872_v16, 0.0 }
 0x228   :  { %v876_v22 = vmax.f32 %v864_v18, 0.0 }
 0x229   :  { %v880_v23 = vpack.c.bf16 %v878_v20, %v877_v19 }
 0x22a   :  { %v879_v24 = vpack.c.bf16 %v876_v22, %v875_v21 }
 0x22c   :  { %1334 = vmatprep.mubr.msk.bf16.mxu0 %vm920_vm1, %v879_v24 }
 0x22d   :  { %1335 = vmatmul.mubr.msk.bf16.vlgmr.msra.gmra.mrb[16].mxu0 %vm920_vm1, %v880_v23 }
 0x22e   :  { %1339 = vmatpush3.bf16.msra.mxu0 %v1431_v25 }
 0x22f   :  { %1340 = vmatprep.subr.bf16.mxu0 %v1432_v26 }
 0x232   :  { %1341 = vmatpush3.bf16.msra.mxu0 %v1432_v26 }
 0x300   :  { %v1336_v28 = vpop.f32.mrb[16].mxu0 }
 0x301   :  { %v970_v29 = vadd.f32 %v1336_v28, %v1162_v27  ;;  %v961_v30 = vpop.f32.mrb[17].mxu0 }
 0x302   :  { %v962_v31 = vadd.f32 %v1162_v27, %v961_v30  ;;  %v1337_v32 = vpop.f32.mrb[18].mxu0 }
 0x303   :  { %v973_v33 = vadd.f32 %v1337_v32, %v1162_v27  ;;  %v964_v34 = vpop.f32.mrb[19].mxu0  ;;  %v978_v36 = vmax.f32 %v970_v29, 0.0 }
 0x304   :  { %v965_v35 = vadd.f32 %v1162_v27, %v964_v34  ;;  %v976_v38 = vmax.f32 %v962_v31, 0.0 }
 0x305   :  { %v979_v37 = vmax.f32 %v973_v33, 0.0 }
 0x306   :  { %v977_v39 = vmax.f32 %v965_v35, 0.0 }
 0x307   :  { %v981_v40 = vpack.c.bf16 %v979_v37, %v978_v36 }
 0x308   :  { %v980_v41 = vpack.c.bf16 %v977_v39, %v976_v38 }
 0x30a   :  { %1342 = vmatprep.mubr.msk.bf16.mxu0 %vm1005_vm2, %v980_v41 }
 0x30b   :  { %1343 = vmatmul.mubr.msk.bf16.vlgmr.msra.gmra.mrb[20].mxu0 %vm1005_vm2, %v981_v40 }
 0x3de   :  { %v1344_v42 = vpop.f32.mrb[20].mxu0 }
 0x3df   :  { %v1046_v44 = vpop.f32.mrb[21].mxu0  ;;  %v1055_v46 = vadd.f32 %v1344_v42, %v1169_v43 }
 0x3e0   :  { %v1345_v45 = vpop.f32.mrb[22].mxu0  ;;  %v1047_v49 = vadd.f32 %v1169_v43, %v1046_v44 }
 0x3e1   :  { %v1058_v47 = vadd.f32 %v1345_v45, %v1169_v43  ;;  %v1049_v48 = vpop.f32.mrb[23].mxu0 }
 0x3e2   :  { %v1050_v50 = vadd.f32 %v1169_v43, %v1049_v48 }
 0x3e3   :  { %v1190_v51 = vpack.c.bf16 %v1058_v47, %v1055_v46 }
 0x3e4   :  { %v1185_v52 = vpack.c.bf16 %v1050_v50, %v1047_v49 }
 0x3e5   :  { %1192 = vst [vmem:[%s1664_s9 + $0x8] sm:$0xff] %v1190_v51  }
 0x3e6   :  { %1186 = vst [vmem:[%s1664_s9] sm:$0xff] %v1185_v52  }
 0x3e7   :  { %1085 = vsyncpa [#allocation3], 1 }
 0x3e8   :  { %1086 = vsyncpa [#allocation5], 1 }

</bundles_post_ra>
